<compile_context>
chip_gen: v7x
topology: tpu7x:2x2x1
jax: 0.10.0
libtpu: 0.0.40
codegen_flags: <defaults>
</compile_context>

<pallas_src>
import jax
import jax.numpy as jnp
import numpy as np
from jax import lax
from jax.experimental import pallas as pl
from jax.experimental.pallas import tpu as pltpu

HIDDEN = 32      # hidden_size
VOCAB = 64       # output_size
MAX_LEN = 10     # max_length / encoder sequence length
L_PAD = 16       # encoder rows padded to a sublane multiple

# ---- bf16 MXU-weight slab layout: (W_ROWS, 128) bf16 ------------------------
R_G = 0                          # rows [0,96):   fused GRU RHS  (lanes: [rz | gi_n | gh_n])
R_WA = 3 * HIDDEN                # rows [96,128): W_a (H,H) in lanes [0,32)
R_WOH = R_WA + HIDDEN            # rows [128,160): W_o[:, :H].T  (H,V) in lanes [0,64)
R_WOC = R_WOH + HIDDEN           # rows [160,192): W_o[:, H:].T  (H,V) in lanes [0,64)
W_ROWS = R_WOC + HIDDEN          # 192 (multiple of the bf16 sublane tile 16)

# ---- f32 constants slab layout: (C_ROWS, 128) f32 ---------------------------
R_BIAS = 0                       # row 0: [b_rz_fused (64) | b_ih_n (32) | b_hh_n (32)]
R_BO = 1                         # row 1: b_o in lanes [0,64)
R_MASK = 2                       # row 2: additive score mask (0 valid / -1e30 padded)
R_EMB = 8                        # rows [8, 8+V): embedding table in lanes [0,32)
C_ROWS = R_EMB + VOCAB           # 72

# ---- activation slab layout: (A_ROWS, 128) f32 ------------------------------
A_ENC = 0                        # rows [0,16):  padded encoder outputs in lanes [0,32)
A_CTX = L_PAD                    # row 16:       initial context in lanes [0,32)
A_H = L_PAD + 1                  # row 17:       initial hidden  in lanes [0,32)
A_ROWS = 24


# ----------------------------- Pallas kernel --------------------------------
def _decode_kernel(w_ref, c_ref, act_ref, tok_ref, step_ref, state_ref):
    """Runs T decoder steps with all weights VMEM-resident; T = tok_ref.shape[0]."""
    H, V, LP = HIDDEN, VOCAB, L_PAD
    T = tok_ref.shape[0]

    # -------- loop-invariant preamble (hoisted off the serial per-step chain) --------
    enc = act_ref[A_ENC:A_ENC + LP, :][:, :H]                     # (16, 32) f32 padded enc outputs
    enc_bf = enc.astype(jnp.bfloat16)
    # E_att[k, j] = sum_m W_a[k, m] * enc[j, m]  ->  scores = h_new @ E_att.
    # b_a's score contribution is constant over j and cancels in softmax (exact).
    e_att = lax.dot_general(w_ref[R_WA:R_WA + H, :][:, :H], enc_bf,
                            (((1,), (1,)), ((), ())),
                            preferred_element_type=jnp.float32)   # (32, 16)
    # P_ctx[j, v] = sum_m enc[j, m] * W_o[v, H + m]   (ctx-side partial logits)
    p_ctx = jnp.dot(enc_bf, w_ref[R_WOC:R_WOC + H, :][:, :V],
                    preferred_element_type=jnp.float32)           # (16, 64)
    # fused per-step RHS #2:  h_new @ [E_att | W_o_h^T]  ->  [scores | h-part logits]
    rhs_h = jnp.concatenate(
        [e_att,
         w_ref[R_WOH:R_WOH + H, :][:, :V].astype(jnp.float32),
         jnp.zeros((H, 128 - LP - V), jnp.float32)],
        axis=1).astype(jnp.bfloat16)                              # (32, 128)
    # fused per-step RHS #3:  attn @ [enc | enc @ W_o_ctx^T]  ->  [ctx_new | ctx-part logits]
    rhs_a = jnp.concatenate(
        [enc, p_ctx, jnp.zeros((LP, 128 - H - V), jnp.float32)],
        axis=1).astype(jnp.bfloat16)                              # (16, 128)

    g_w = w_ref[R_G:R_G + 3 * H, :]                               # (96, 128) bf16 fused GRU RHS
    bias = c_ref[R_BIAS:R_BIAS + 1, :]                            # (1, 128) fused GRU biases (f32)
    b_o = c_ref[R_BO:R_BO + 1, :][:, :V]                          # (1, 64)
    mask = c_ref[R_MASK:R_MASK + 1, :][:, :LP]                    # (1, 16) 0 / -1e30
    ctx0 = act_ref[A_CTX:A_CTX + 1, :][:, :H]                     # (1, 32)
    h0 = act_ref[A_H:A_H + 1, :][:, :H]                           # (1, 32)
    zrow = jnp.zeros((1, 128 - V - LP), jnp.float32)              # hoisted out of the loop
    zpad = jnp.zeros((1, 128 - H), jnp.float32)

    def step(t, carry):
        h, ctx = carry                                            # (1, 32) f32 each
        # TODO(synk): nn.Dropout(p=0.1) on the embedding is omitted (eval-mode identity).
        emb = c_ref[pl.ds(R_EMB + tok_ref[t], 1), :][:, :H]       # (1, 32) in-kernel embedding gather

        # --- GRU cell: ONE (1,96)x(96,128) matmul.
        #     lanes [0,64) = gi_rz + gh_rz, [64,96) = gi_n, [96,128) = gh_n
        lhs = jnp.concatenate([emb, ctx, h], axis=1).astype(jnp.bfloat16)      # (1, 96)
        g = jnp.dot(lhs, g_w, preferred_element_type=jnp.float32)              # (1, 128) f32
        rz = jax.nn.sigmoid(g[:, :2 * H] + bias[:, :2 * H])
        r = rz[:, :H]
        z = rz[:, H:2 * H]
        n = jnp.tanh(g[:, 2 * H:3 * H] + bias[:, 2 * H:3 * H]
                     + r * (g[:, 3 * H:4 * H] + bias[:, 3 * H:4 * H]))
        h_new = (1.0 - z) * n + z * h                                          # (1, 32) f32

        # --- attention scores + h-side logits: ONE (1,32)x(32,128) matmul
        sh = jnp.dot(h_new.astype(jnp.bfloat16), rhs_h,
                     preferred_element_type=jnp.float32)                       # (1, 128)
        scores = sh[:, :LP] + mask                                             # (1, 16)
        m = jnp.max(scores, axis=1, keepdims=True)
        e = jnp.exp(scores - m)
        s = jnp.sum(e, axis=1, keepdims=True)
        inv = pl.reciprocal(s, approx=True)
        inv = inv * (2.0 - s * inv)                    # one Newton step -> full f32 accuracy
        attn = e * inv                                                         # (1, 16) f32

        # --- context + ctx-side logits: ONE (1,16)x(16,128) matmul
        ca = jnp.dot(attn.astype(jnp.bfloat16), rhs_a,
                     preferred_element_type=jnp.float32)                       # (1, 128)
        ctx_new = ca[:, :H]                                                    # (1, 32) f32

        # --- fused output projection + log-softmax (h-part + ctx-part + b_o)
        logits = sh[:, LP:LP + V] + ca[:, H:H + V] + b_o                       # (1, 64)
        mx = jnp.max(logits, axis=1, keepdims=True)
        lse = mx + jnp.log(jnp.sum(jnp.exp(logits - mx), axis=1, keepdims=True))
        logp = logits - lse

        # one lane-dense 128-wide packed row per step: [logp | attn | 0]
        # (an (8,128) scratch flushed every 8 steps would avoid the per-step masked sublane
        #  store, but it only pays off for T >~ 16)
        step_ref[pl.ds(t, 1), :] = jnp.concatenate([logp, attn, zrow], axis=1)
        return (h_new, ctx_new)

    # TODO(synk): a greedy autoregressive variant (in-kernel argmax feeding the embedding
    # gather) is now enabled by the in-slab embedding table but is out of scope for the
    # teacher-forced module semantics verified here.
    h_fin, ctx_fin = lax.fori_loop(0, T, step, (h0, ctx0),
                                   unroll=True if T <= 8 else 2)

    # final-state block: row 0 = context, row 1 = hidden (lane-dense (8,128) store)
    state_ref[...] = jnp.concatenate(
        [jnp.concatenate([ctx_fin, zpad], axis=1),
         jnp.concatenate([h_fin, zpad], axis=1),
         jnp.zeros((6, 128), jnp.float32)], axis=0)


def _decoder_call(wslab, cslab, act, token_ids):
    # TODO(synk): for batched independent sequences on v7x, add a leading "parallel" grid
    # axis so each TensorCore runs its own sequences; single-sequence stays grid-less.
    T = token_ids.shape[0]
    vmem = pl.BlockSpec(memory_space=pltpu.MemorySpace.VMEM)
    smem = pl.BlockSpec(memory_space=pltpu.MemorySpace.SMEM)
    return pl.pallas_call(
        _decode_kernel,
        out_shape=(jax.ShapeDtypeStruct((T, 128), jnp.float32),   # per-step [logp | attn]
                   jax.ShapeDtypeStruct((8, 128), jnp.float32)),  # final context / hidden
        in_specs=[vmem, vmem, vmem, smem],
        out_specs=(vmem, vmem),
    )(wslab, cslab, act, token_ids)


# ------------------------------ packing helpers ------------------------------
def pack_param_slabs(raw, emb, H, V, L):
    assert 4 * H == 128 and 3 * H <= 128 and V + L_PAD <= 128 and H + V <= 128
    W_ih = np.asarray(raw["W_ih"], np.float32)      # (3H, 2H)
    W_hh = np.asarray(raw["W_hh"], np.float32)      # (3H, H)
    W_o = np.asarray(raw["W_o"], np.float32)        # (V, 2H)

    # fused GRU RHS: LHS = [emb | ctx | h] (1, 3H); output lanes [rz | gi_n | gh_n]
    G = np.zeros((3 * H, 128), np.float32)
    G[:2 * H, :2 * H] = W_ih.T[:, :2 * H]           # r,z input half
    G[2 * H:, :2 * H] = W_hh.T[:, :2 * H]           # r,z hidden half (summed by the matmul)
    G[:2 * H, 2 * H:3 * H] = W_ih.T[:, 2 * H:]      # n input half (kept separate)
    G[2 * H:, 3 * H:4 * H] = W_hh.T[:, 2 * H:]      # n hidden half (kept separate)

    wslab = np.zeros((W_ROWS, 128), np.float32)
    wslab[R_G:R_G + 3 * H, :] = G
    wslab[R_WA:R_WA + H, :H] = np.asarray(raw["W_a"], np.float32)   # scores = h @ W_a @ enc^T
    wslab[R_WOH:R_WOH + H, :V] = W_o[:, :H].T                       # h-side output projection
    wslab[R_WOC:R_WOC + H, :V] = W_o[:, H:].T                       # ctx-side output projection

    cslab = np.zeros((C_ROWS, 128), np.float32)
    b_ih = np.asarray(raw["b_ih"], np.float32)
    b_hh = np.asarray(raw["b_hh"], np.float32)
    cslab[R_BIAS, :2 * H] = b_ih[:2 * H] + b_hh[:2 * H]             # fused r/z bias
    cslab[R_BIAS, 2 * H:3 * H] = b_ih[2 * H:]
    cslab[R_BIAS, 3 * H:4 * H] = b_hh[2 * H:]
    cslab[R_BO, :V] = np.asarray(raw["b_o"], np.float32)
    cslab[R_MASK, :L_PAD] = np.where(np.arange(L_PAD) < L, 0.0, -1e30).astype(np.float32)
    cslab[R_EMB:R_EMB + V, :H] = np.asarray(emb, np.float32)        # embedding table in-slab
    # note: b_a not needed in-kernel (its score contribution cancels in softmax);
    #       attn_combine exists in __init__ but is unused in forward — not created.
    return jnp.asarray(wslab, jnp.bfloat16), jnp.asarray(cslab, jnp.float32)


def pack_act_slab(context0, hidden0, encoder_outputs):
    """Single concatenate + pad (no .at[].set chains)."""
    L = encoder_outputs.shape[0]
    rows = jnp.concatenate(
        [encoder_outputs.astype(jnp.float32),
         jnp.zeros((L_PAD - L, HIDDEN), jnp.float32),
         context0.reshape(1, HIDDEN).astype(jnp.float32),
         hidden0.reshape(1, HIDDEN).astype(jnp.float32)], axis=0)   # (L_PAD + 2, H)
    return jnp.pad(rows, ((0, A_ROWS - (L_PAD + 2)), (0, 128 - HIDDEN)))


# --------------------------------- wrappers ----------------------------------
@jax.jit
def gen_attn_decoder_forward(params, input_idx, last_context, last_hidden, encoder_outputs):
    """Single decoder step == GenAttnDecoderRNN.forward (eval mode)."""
    H, V, L = HIDDEN, VOCAB, MAX_LEN
    act = pack_act_slab(last_context, last_hidden, encoder_outputs)
    tok = jnp.asarray(input_idx, jnp.int32).reshape(1)
    step_out, state_out = _decoder_call(params["wslab"], params["cslab"], act, tok)
    output = step_out[0:1, :V]                           # (1, output_size) log-probs
    attn_weights = step_out[0:1, V:V + L].reshape(1, 1, L)
    context = state_out[0:1, :H]                         # (1, hidden_size)
    hidden = state_out[1:2, :H].reshape(1, 1, H)         # (1, 1, hidden_size)
    return output, context, hidden, attn_weights


@jax.jit
def gen_attn_decoder_decode(params, token_ids, init_context, init_hidden, encoder_outputs):
    """T teacher-forced decoder steps in ONE pallas_call: launch + weight DMA amortized,
    weights/encoder outputs VMEM-resident, h/context carried inside the kernel."""
    H, V, L = HIDDEN, VOCAB, MAX_LEN
    act = pack_act_slab(init_context, init_hidden, encoder_outputs)
    step_out, state_out = _decoder_call(params["wslab"], params["cslab"], act,
                                        token_ids.astype(jnp.int32))
    logps = step_out[:, :V]                               # (T, V)
    attns = step_out[:, V:V + L]                          # (T, L)
    context = state_out[0:1, :H]
    hidden = state_out[1:2, :H].reshape(1, 1, H)
    return logps, attns, context, hidden


# ------------------------- deterministic parameters --------------------------
def init_params(key, hidden_size, output_size, max_length):
    ks = jax.random.split(key, 9)
    s = 0.1
    emb = jax.random.normal(ks[0], (output_size, hidden_size), jnp.float32) * s
    raw = dict(
        W_ih=jax.random.normal(ks[1], (3 * hidden_size, 2 * hidden_size), jnp.float32) * s,
        W_hh=jax.random.normal(ks[2], (3 * hidden_size, hidden_size), jnp.float32) * s,
        b_ih=jax.random.normal(ks[3], (3 * hidden_size,), jnp.float32) * s,
        b_hh=jax.random.normal(ks[4], (3 * hidden_size,), jnp.float32) * s,
        W_a=jax.random.normal(ks[5], (hidden_size, hidden_size), jnp.float32) * s,
        b_a=jax.random.normal(ks[6], (hidden_size,), jnp.float32) * s,
        W_o=jax.random.normal(ks[7], (output_size, 2 * hidden_size), jnp.float32) * s,
        b_o=jax.random.normal(ks[8], (output_size,), jnp.float32) * s,
    )
    wslab, cslab = pack_param_slabs(raw, emb, hidden_size, output_size, max_length)
    return dict(emb=emb, raw=raw, wslab=wslab, cslab=cslab)


# ------------------------------ pure-JAX reference ---------------------------
def reference_forward(params, token, last_context, last_hidden, encoder_outputs):
    """f32 implementation of the PyTorch module math (eval mode)."""
    raw = params["raw"]
    H = HIDDEN
    emb = params["emb"][token].reshape(1, H)
    x = jnp.concatenate([emb, last_context.reshape(1, H)], axis=1)
    h = last_hidden.reshape(1, H)
    gi = x @ raw["W_ih"].T + raw["b_ih"]
    gh = h @ raw["W_hh"].T + raw["b_hh"]
    r = jax.nn.sigmoid(gi[:, :H] + gh[:, :H])
    z = jax.nn.sigmoid(gi[:, H:2 * H] + gh[:, H:2 * H])
    n = jnp.tanh(gi[:, 2 * H:] + r * gh[:, 2 * H:])
    h_new = (1.0 - z) * n + z * h
    energy = encoder_outputs @ raw["W_a"].T + raw["b_a"]
    scores = jnp.sum(energy * h_new, axis=1)[None, :]
    attn = jax.nn.softmax(scores, axis=1)
    ctx = attn @ encoder_outputs
    logits = jnp.concatenate([h_new, ctx], axis=1) @ raw["W_o"].T + raw["b_o"]
    logp = jax.nn.log_softmax(logits, axis=1)
    return logp, ctx, h_new.reshape(1, 1, H), attn.reshape(1, 1, -1)


if __name__ == "__main__":
    key = jax.random.PRNGKey(0)
    kp, ki = jax.random.split(key)
    params = init_params(kp, HIDDEN, VOCAB, MAX_LEN)

    k1, k2, k3 = jax.random.split(ki, 3)
    input_idx = jnp.array(3, dtype=jnp.int32)                                # token id
    last_context = jax.random.normal(k1, (1, HIDDEN), jnp.float32)           # (1, H)
    last_hidden = jnp.zeros((1, 1, HIDDEN), jnp.float32)                     # initHidden()
    encoder_outputs = jax.random.normal(k2, (MAX_LEN, HIDDEN), jnp.float32)  # (L, H)

    # Tolerance note: MXU operands are bf16 (f32 accumulation); vs the pure-f32 reference the
    # expected deviation is a few 1e-3, so 2e-2 gives a ~5x margin.
    TOL = 2e-2

    # --- single step (== module forward) -------------------------------------
    out = gen_attn_decoder_forward(params, input_idx, last_context,
                                   last_hidden, encoder_outputs)
    out = jax.block_until_ready(out)
    ref = reference_forward(params, input_idx, last_context,
                            last_hidden, encoder_outputs)
    for got, want in zip(out, ref):
        np.testing.assert_allclose(np.asarray(got), np.asarray(want),
                                   rtol=TOL, atol=TOL)

    # --- T steps in one launch (weights stay VMEM-resident) ------------------
    T = 6
    tokens = jax.random.randint(k3, (T,), 0, VOCAB, dtype=jnp.int32)
    logps, attns, ctx_f, h_f = jax.block_until_ready(
        gen_attn_decoder_decode(params, tokens, last_context, last_hidden,
                                encoder_outputs))
    ctx_r, h_r = last_context, last_hidden
    for t in range(T):
        lp, ctx_r, h_r, aw = reference_forward(params, tokens[t], ctx_r, h_r,
                                               encoder_outputs)
        np.testing.assert_allclose(np.asarray(logps[t]), np.asarray(lp[0]),
                                   rtol=TOL, atol=TOL)
        np.testing.assert_allclose(np.asarray(attns[t]), np.asarray(aw).reshape(-1),
                                   rtol=TOL, atol=TOL)
    np.testing.assert_allclose(np.asarray(ctx_f), np.asarray(ctx_r), rtol=TOL, atol=TOL)
    np.testing.assert_allclose(np.asarray(h_f), np.asarray(h_r), rtol=TOL, atol=TOL)

    print("KERNEL_OK")
</pallas_src>

<mosaic_0001>
module attributes {stable_mosaic.version = 11 : i64} {
  func.func @_decode_kernel(%arg0: memref<192x128xbf16, #tpu.memory_space<vmem>>, %arg1: memref<72x128xf32, #tpu.memory_space<vmem>>, %arg2: memref<24x128xf32, #tpu.memory_space<vmem>>, %arg3: memref<1xi32, #tpu.memory_space<smem>>, %arg4: memref<1x128xf32, #tpu.memory_space<vmem>>, %arg5: memref<8x128xf32, #tpu.memory_space<vmem>>) attributes {dimension_semantics = [], scalar_prefetch = 0 : i64, scratch_operands = 0 : i64, tpu.core_type = #tpu.core_type<tc>} {
    %c0 = arith.constant 0 : index
    %c0_0 = arith.constant 0 : index
    %0 = vector.load %arg2[%c0, %c0_0] : memref<24x128xf32, #tpu.memory_space<vmem>>, vector<16x128xf32>
    %1 = vector.extract_strided_slice %0 {offsets = [0, 0], sizes = [16, 32], strides = [1, 1]} : vector<16x128xf32> to vector<16x32xf32>
    %2 = arith.truncf %1 : vector<16x32xf32> to vector<16x32xbf16>
    %c96 = arith.constant 96 : index
    %c0_1 = arith.constant 0 : index
    %3 = vector.load %arg0[%c96, %c0_1] : memref<192x128xbf16, #tpu.memory_space<vmem>>, vector<32x128xbf16>
    %4 = vector.extract_strided_slice %3 {offsets = [0, 0], sizes = [32, 32], strides = [1, 1]} : vector<32x128xbf16> to vector<32x32xbf16>
    %cst = arith.constant dense<0.000000e+00> : vector<32x16xf32>
    %5 = tpu.matmul %4, %2, %cst {dimension_numbers = #tpu.dot_dimension_numbers<[1], [1], [0], [0], [0, 0, 1, 0], [], []>} : vector<32x32xbf16>, vector<16x32xbf16>, vector<32x16xf32> -> vector<32x16xf32>
    %c160 = arith.constant 160 : index
    %c0_2 = arith.constant 0 : index
    %6 = vector.load %arg0[%c160, %c0_2] : memref<192x128xbf16, #tpu.memory_space<vmem>>, vector<32x128xbf16>
    %7 = vector.extract_strided_slice %6 {offsets = [0, 0], sizes = [32, 64], strides = [1, 1]} : vector<32x128xbf16> to vector<32x64xbf16>
    %cst_3 = arith.constant dense<0.000000e+00> : vector<16x64xf32>
    %8 = tpu.matmul %2, %7, %cst_3 {dimension_numbers = #tpu.dot_dimension_numbers<[1], [0], [0], [1], [0, 0, 1, 1], [], []>} : vector<16x32xbf16>, vector<32x64xbf16>, vector<16x64xf32> -> vector<16x64xf32>
    %c128 = arith.constant 128 : index
    %c0_4 = arith.constant 0 : index
    %9 = vector.load %arg0[%c128, %c0_4] : memref<192x128xbf16, #tpu.memory_space<vmem>>, vector<32x128xbf16>
    %10 = vector.extract_strided_slice %9 {offsets = [0, 0], sizes = [32, 64], strides = [1, 1]} : vector<32x128xbf16> to vector<32x64xbf16>
    %11 = arith.extf %10 : vector<32x64xbf16> to vector<32x64xf32>
    %cst_5 = arith.constant 0.000000e+00 : f32
    %12 = vector.broadcast %cst_5 : f32 to vector<32x48xf32>
    %13 = tpu.concatenate %5, %11, %12 in 1 : vector<32x16xf32>, vector<32x64xf32>, vector<32x48xf32> -> vector<32x128xf32>
    %14 = arith.truncf %13 : vector<32x128xf32> to vector<32x128xbf16>
    %cst_6 = arith.constant 0.000000e+00 : f32
    %15 = vector.broadcast %cst_6 : f32 to vector<16x32xf32>
    %16 = tpu.concatenate %1, %8, %15 in 1 : vector<16x32xf32>, vector<16x64xf32>, vector<16x32xf32> -> vector<16x128xf32>
    %17 = arith.truncf %16 : vector<16x128xf32> to vector<16x128xbf16>
    %c0_7 = arith.constant 0 : index
    %c0_8 = arith.constant 0 : index
    %18 = vector.load %arg0[%c0_7, %c0_8] : memref<192x128xbf16, #tpu.memory_space<vmem>>, vector<96x128xbf16>
    %c0_9 = arith.constant 0 : index
    %c0_10 = arith.constant 0 : index
    %19 = vector.load %arg1[%c0_9, %c0_10] : memref<72x128xf32, #tpu.memory_space<vmem>>, vector<1x128xf32>
    %c1 = arith.constant 1 : index
    %c0_11 = arith.constant 0 : index
    %20 = vector.load %arg1[%c1, %c0_11] : memref<72x128xf32, #tpu.memory_space<vmem>>, vector<1x128xf32>
    %21 = vector.extract_strided_slice %20 {offsets = [0, 0], sizes = [1, 64], strides = [1, 1]} : vector<1x128xf32> to vector<1x64xf32>
    %c2 = arith.constant 2 : index
    %c0_12 = arith.constant 0 : index
    %22 = vector.load %arg1[%c2, %c0_12] : memref<72x128xf32, #tpu.memory_space<vmem>>, vector<1x128xf32>
    %23 = vector.extract_strided_slice %22 {offsets = [0, 0], sizes = [1, 16], strides = [1, 1]} : vector<1x128xf32> to vector<1x16xf32>
    %c16 = arith.constant 16 : index
    %c0_13 = arith.constant 0 : index
    %24 = vector.load %arg2[%c16, %c0_13] : memref<24x128xf32, #tpu.memory_space<vmem>>, vector<1x128xf32>
    %25 = vector.extract_strided_slice %24 {offsets = [0, 0], sizes = [1, 32], strides = [1, 1]} : vector<1x128xf32> to vector<1x32xf32>
    %c17 = arith.constant 17 : index
    %c0_14 = arith.constant 0 : index
    %26 = vector.load %arg2[%c17, %c0_14] : memref<24x128xf32, #tpu.memory_space<vmem>>, vector<1x128xf32>
    %27 = vector.extract_strided_slice %26 {offsets = [0, 0], sizes = [1, 32], strides = [1, 1]} : vector<1x128xf32> to vector<1x32xf32>
    %cst_15 = arith.constant 0.000000e+00 : f32
    %28 = vector.broadcast %cst_15 : f32 to vector<1x48xf32>
    %cst_16 = arith.constant 0.000000e+00 : f32
    %29 = vector.broadcast %cst_16 : f32 to vector<1x96xf32>
    %c0_i32 = arith.constant 0 : i32
    %30 = arith.index_cast %c0_i32 : i32 to index
    %31 = memref.load %arg3[%30] : memref<1xi32, #tpu.memory_space<smem>>
    %c8_i32 = arith.constant 8 : i32
    %32 = arith.addi %c8_i32, %31 : i32
    %33 = arith.index_cast %32 : i32 to index
    %c0_17 = arith.constant 0 : index
    %34 = vector.load %arg1[%33, %c0_17] : memref<72x128xf32, #tpu.memory_space<vmem>>, vector<1x128xf32>
    %35 = vector.extract_strided_slice %34 {offsets = [0, 0], sizes = [1, 32], strides = [1, 1]} : vector<1x128xf32> to vector<1x32xf32>
    %36 = tpu.concatenate %35, %25, %27 in 1 : vector<1x32xf32>, vector<1x32xf32>, vector<1x32xf32> -> vector<1x96xf32>
    %37 = arith.truncf %36 : vector<1x96xf32> to vector<1x96xbf16>
    %cst_18 = arith.constant dense<0.000000e+00> : vector<1x128xf32>
    %38 = tpu.matmul %37, %18, %cst_18 {dimension_numbers = #tpu.dot_dimension_numbers<[1], [0], [0], [1], [0, 0, 1, 1], [], []>} : vector<1x96xbf16>, vector<96x128xbf16>, vector<1x128xf32> -> vector<1x128xf32>
    %39 = vector.extract_strided_slice %38 {offsets = [0, 0], sizes = [1, 64], strides = [1, 1]} : vector<1x128xf32> to vector<1x64xf32>
    %40 = vector.extract_strided_slice %19 {offsets = [0, 0], sizes = [1, 64], strides = [1, 1]} : vector<1x128xf32> to vector<1x64xf32>
    %41 = arith.addf %39, %40 : vector<1x64xf32>
    %42 = arith.negf %41 : vector<1x64xf32>
    %43 = math.exp %42 : vector<1x64xf32>
    %cst_19 = arith.constant 1.000000e+00 : f32
    %44 = vector.broadcast %cst_19 : f32 to vector<1x64xf32>
    %45 = arith.addf %44, %43 : vector<1x64xf32>
    %46 = arith.divf %44, %45 : vector<1x64xf32>
    %47 = vector.extract_strided_slice %46 {offsets = [0, 0], sizes = [1, 32], strides = [1, 1]} : vector<1x64xf32> to vector<1x32xf32>
    %48 = vector.extract_strided_slice %46 {offsets = [0, 32], sizes = [1, 32], strides = [1, 1]} : vector<1x64xf32> to vector<1x32xf32>
    %49 = vector.extract_strided_slice %38 {offsets = [0, 64], sizes = [1, 32], strides = [1, 1]} : vector<1x128xf32> to vector<1x32xf32>
    %50 = vector.extract_strided_slice %19 {offsets = [0, 64], sizes = [1, 32], strides = [1, 1]} : vector<1x128xf32> to vector<1x32xf32>
    %51 = arith.addf %49, %50 : vector<1x32xf32>
    %52 = vector.extract_strided_slice %38 {offsets = [0, 96], sizes = [1, 32], strides = [1, 1]} : vector<1x128xf32> to vector<1x32xf32>
    %53 = vector.extract_strided_slice %19 {offsets = [0, 96], sizes = [1, 32], strides = [1, 1]} : vector<1x128xf32> to vector<1x32xf32>
    %54 = arith.addf %52, %53 : vector<1x32xf32>
    %55 = arith.mulf %47, %54 : vector<1x32xf32>
    %56 = arith.addf %51, %55 : vector<1x32xf32>
    %57 = math.tanh %56 : vector<1x32xf32>
    %cst_20 = arith.constant 1.000000e+00 : f32
    %58 = vector.broadcast %cst_20 : f32 to vector<1x32xf32>
    %59 = arith.subf %58, %48 : vector<1x32xf32>
    %60 = arith.mulf %59, %57 : vector<1x32xf32>
    %61 = arith.mulf %48, %27 : vector<1x32xf32>
    %62 = arith.addf %60, %61 : vector<1x32xf32>
    %63 = arith.truncf %62 : vector<1x32xf32> to vector<1x32xbf16>
    %cst_21 = arith.constant dense<0.000000e+00> : vector<1x128xf32>
    %64 = tpu.matmul %63, %14, %cst_21 {dimension_numbers = #tpu.dot_dimension_numbers<[1], [0], [0], [1], [0, 0, 1, 1], [], []>} : vector<1x32xbf16>, vector<32x128xbf16>, vector<1x128xf32> -> vector<1x128xf32>
    %65 = vector.extract_strided_slice %64 {offsets = [0, 0], sizes = [1, 16], strides = [1, 1]} : vector<1x128xf32> to vector<1x16xf32>
    %66 = arith.addf %65, %23 : vector<1x16xf32>
    %cst_22 = arith.constant dense<0xFF800000> : vector<1xf32>
    %67 = vector.multi_reduction <maximumf>, %66, %cst_22 [1] : vector<1x16xf32> to vector<1xf32>
    %68 = vector.shape_cast %67 : vector<1xf32> to vector<1x1xf32>
    %69 = vector.broadcast %68 : vector<1x1xf32> to vector<1x16xf32>
    %70 = arith.subf %66, %69 : vector<1x16xf32>
    %71 = math.exp %70 : vector<1x16xf32>
    %cst_23 = arith.constant dense<0.000000e+00> : vector<1xf32>
    %72 = vector.multi_reduction <add>, %71, %cst_23 [1] : vector<1x16xf32> to vector<1xf32>
    %73 = vector.shape_cast %72 : vector<1xf32> to vector<1x1xf32>
    %74 = tpu.reciprocal %73 {approx = true} : vector<1x1xf32> -> vector<1x1xf32>
    %75 = arith.mulf %73, %74 : vector<1x1xf32>
    %cst_24 = arith.constant 2.000000e+00 : f32
    %76 = vector.broadcast %cst_24 : f32 to vector<1x1xf32>
    %77 = arith.subf %76, %75 : vector<1x1xf32>
    %78 = arith.mulf %74, %77 : vector<1x1xf32>
    %79 = vector.broadcast %78 : vector<1x1xf32> to vector<1x16xf32>
    %80 = arith.mulf %71, %79 : vector<1x16xf32>
    %81 = arith.truncf %80 : vector<1x16xf32> to vector<1x16xbf16>
    %cst_25 = arith.constant dense<0.000000e+00> : vector<1x128xf32>
    %82 = tpu.matmul %81, %17, %cst_25 {dimension_numbers = #tpu.dot_dimension_numbers<[1], [0], [0], [1], [0, 0, 1, 1], [], []>} : vector<1x16xbf16>, vector<16x128xbf16>, vector<1x128xf32> -> vector<1x128xf32>
    %83 = vector.extract_strided_slice %82 {offsets = [0, 0], sizes = [1, 32], strides = [1, 1]} : vector<1x128xf32> to vector<1x32xf32>
    %84 = vector.extract_strided_slice %64 {offsets = [0, 16], sizes = [1, 64], strides = [1, 1]} : vector<1x128xf32> to vector<1x64xf32>
    %85 = vector.extract_strided_slice %82 {offsets = [0, 32], sizes = [1, 64], strides = [1, 1]} : vector<1x128xf32> to vector<1x64xf32>
    %86 = arith.addf %84, %85 : vector<1x64xf32>
    %87 = arith.addf %86, %21 : vector<1x64xf32>
    %cst_26 = arith.constant dense<0xFF800000> : vector<1xf32>
    %88 = vector.multi_reduction <maximumf>, %87, %cst_26 [1] : vector<1x64xf32> to vector<1xf32>
    %89 = vector.shape_cast %88 : vector<1xf32> to vector<1x1xf32>
    %90 = vector.broadcast %89 : vector<1x1xf32> to vector<1x64xf32>
    %91 = arith.subf %87, %90 : vector<1x64xf32>
    %92 = math.exp %91 : vector<1x64xf32>
    %cst_27 = arith.constant dense<0.000000e+00> : vector<1xf32>
    %93 = vector.multi_reduction <add>, %92, %cst_27 [1] : vector<1x64xf32> to vector<1xf32>
    %94 = vector.shape_cast %93 : vector<1xf32> to vector<1x1xf32>
    %95 = math.log %94 : vector<1x1xf32>
    %96 = arith.addf %89, %95 : vector<1x1xf32>
    %97 = vector.broadcast %96 : vector<1x1xf32> to vector<1x64xf32>
    %98 = arith.subf %87, %97 : vector<1x64xf32>
    %99 = tpu.concatenate %98, %80, %28 in 1 : vector<1x64xf32>, vector<1x16xf32>, vector<1x48xf32> -> vector<1x128xf32>
    %100 = arith.index_cast %c0_i32 : i32 to index
    %c0_28 = arith.constant 0 : index
    %101 = vector.load %arg4[%100, %c0_28] : memref<1x128xf32, #tpu.memory_space<vmem>>, vector<1x128xf32>
    tpu.vector_store %arg4[%100, %c0_28], %99 {strides = array<i32>} : memref<1x128xf32, #tpu.memory_space<vmem>>, vector<1x128xf32>,
    %c1_i32 = arith.constant 1 : i32
    %102 = tpu.concatenate %83, %29 in 1 : vector<1x32xf32>, vector<1x96xf32> -> vector<1x128xf32>
    %103 = tpu.concatenate %62, %29 in 1 : vector<1x32xf32>, vector<1x96xf32> -> vector<1x128xf32>
    %cst_29 = arith.constant 0.000000e+00 : f32
    %104 = vector.broadcast %cst_29 : f32 to vector<6x128xf32>
    %105 = tpu.concatenate %102, %103, %104 in 0 : vector<1x128xf32>, vector<1x128xf32>, vector<6x128xf32> -> vector<8x128xf32>
    %c0_30 = arith.constant 0 : index
    %c0_31 = arith.constant 0 : index
    %106 = vector.load %arg5[%c0_30, %c0_31] : memref<8x128xf32, #tpu.memory_space<vmem>>, vector<8x128xf32>
    tpu.vector_store %arg5[%c0_30, %c0_31], %105 {strides = array<i32>} : memref<8x128xf32, #tpu.memory_space<vmem>>, vector<8x128xf32>,
    return
  }
}

</mosaic_0001>

<bundles_post_ra>
// kernel: gen_attn_decoder_forward.1
= control target key start
LH: loop header
LB: loop body
LE: loop exit
PB: predicated region body
PF: predicated region fallthrough
CT: control target
= control target key end

     0   :  { %12 = vsyncpa [#allocation4], 0  ;;  %s704_s18 = smov [#allocation3]   ;;  %s897_s0 = inlined_call_operand.vmem [shape: bf16[192,128], index: 0, kind: input, shape index: {}]   ;;  %s898_s1 = inlined_call_operand.hbm [shape: f32[72,128], index: 1, kind: input, shape index: {}]   ;;  %s899_s2 = inlined_call_operand.vmem [shape: f32[24,128], index: 2, kind: input, shape index: {}]   ;;  %s900_s3 = inlined_call_operand.<no memory space> [shape: s32[1], index: 3, kind: input, shape index: {}]   ;;  %s901_s4 = inlined_call_operand.vmem [shape: f32[1,128], index: 4, kind: output, shape index: {0}]   ;;  %s902_s5 = inlined_call_operand.vmem [shape: f32[8,128], index: 5, kind: output, shape index: {1}]  }
   0x1   :  { %s20_s19 = sshll.u32 %s704_s18, 4  ;;  %s680_s22 = scalar_lea.hbm %s898_s1, 1152  ;;  %s21_s19 = int_to_ptr.vmem [resolvable:$true] %s20_s19 }
   0x2   :  { %p681_p0 = scmp.ne.s32.totalorder %s898_s1, %s680_s22  ;;  %p684_p1 = scmp.lt.u32.totalorder %s680_s22, %s898_s1 }
   0x4   :  { %p686_p2 = pnand %p684_p1, %p681_p0 }
   0x6   :  { %689 = shalt.err (!%p686_p2)
}
   0x7   :  { %s690_s27 = scalar_lea.vmem %s21_s19, 1152  ;;  %p695_p4 = scmp.lt.s32.totalorder %s21_s19, %s21_s19 }
   0x8   :  { %p691_p3 = scmp.ne.s32.totalorder %s21_s19, %s690_s27  ;;  %p696_p5 = scmp.lt.s32.totalorder %s690_s27, %s690_s27 }
   0xa   :  { %p697_p6 = por %p696_p5, %p695_p4 }
   0xc   :  { %p698_p7 = pnand %p697_p6, %p691_p3 }
   0xe   :  { %701 = shalt.err (!%p698_p7)
}
   0xf   :  { %s705_s28 = smov 128   ;;  %s706_s29 = smov 8  }
  0x10   :  { %26 = dma.hbm_to_vmem [thread:$0]  %s898_s1, 1152, %s21_s19, [#allocation4], %s705_s28, %s705_s28, %s706_s29  }
  0x11   :  { %702 = dma.done.wait [#allocation4], 1152  }
  0x12   :  { %703 = vsyncadd [#allocation4], 4294966144  ;;  %v707_v0 = vmov 0.0   ;;  %vm708_vm0 = vmmov 0   ;;  %v233_v1 = vld [vmem:[%s899_s2 + $0x10] sm:$0x1] }
  0x13   :  { %592 = vmatprep.subr.bf16.mxu1 %v707_v0  ;;  %596 = vmatprep.mubr.msk.bf16.mxu1 %vm708_vm0, %v707_v0  ;;  %v765_v2 = vld [vmem:[%s899_s2 + $0x11] sm:$0x1]  ;;  %v770_v3 = vld [vmem:[%s899_s2] sm:$0xff]  ;;  %s709_s12 = smov 32   ;;  %v776_v4 = vld [vmem:[%s899_s2 + $0x8] sm:$0xff]  ;;  %vm52_vm1 = vcmask 261120  }
  0x14   :  { %240 = vrot.lane.b32.xlu0 %v233_v1, %s709_s12  ;;  %v780_v5 = vpack.c.bf16 %v776_v4, %v770_v3  ;;  %v656_v6 = vld [vmem:[%s897_s0 + $0x30] sm:$0xff]   ;;  %s710_s17 = smov 64   ;;  %v657_v8 = vld [vmem:[%s897_s0 + $0x38] sm:$0xff]   ;;  %v658_v9 = vld [vmem:[%s897_s0] sm:$0xff]   ;;  %s529_s8 = scalar_lea.vmem [#allocation3], %s900_s3  ;;  %vm248_vm2 = vcmask 523264  }
  0x15   :  { %588 = vmatprep.mubr.msk.bf16.mxu0 %vm52_vm1, %v656_v6  ;;  %v659_v10 = vld [vmem:[%s897_s0 + $0x8] sm:$0xff]   ;;  %v660_v11 = vld [vmem:[%s897_s0 + $0x10] sm:$0xff]   ;;  %v661_v12 = vld [vmem:[%s897_s0 + $0x18] sm:$0xff]   ;;  %vm214_vm3 = vcmask 785408   ;;  %s711_s10 = smov 16   ;;  %vm192_vm4 = vcmask 130048  }
  0x16   :  { %630 = vmatprep.subr.msk.bf16.mxu0 %vm52_vm1, %v780_v5  ;;  %v60_v7 = vsel %vm52_vm1, %v780_v5, 0  ;;  %v662_v13 = vld [vmem:[%s897_s0 + $0x20] sm:$0xff]   ;;  %v663_v14 = vld [vmem:[%s897_s0 + $0x28] sm:$0xff]   ;;  %v664_v42 = vld [vmem:[%s897_s0 + $0x50] sm:$0xff]   ;;  %vm197_vm5 = vcmask 654336   ;;  %vm407_vm7 = vcmask 122880  }
  0x17   :  { %587 = vmatpush3.bf16.xpose.msra.mxu0 %v60_v7  ;;  %v538_v16 = vld [vmem:[%s529_s8 + $0x8] sm:$0x1]  ;;  %v230_v25 = vld [vmem:[#allocation3] sm:$0x1]  ;;  %593 = vmatpush3.bf16.msra.mxu1 %v664_v42  ;;  %v665_v45 = vld [vmem:[%s897_s0 + $0x58] sm:$0xff]   ;;  %vm476_vm9 = vcmask 647296  }
  0x18   :  { %244 = vrot.lane.b32.xlu0 %v765_v2, %s710_s17  ;;  %600 = vmatprep.subr.bf16.mxu0 %v707_v0  ;;  %v567_v36 = vld [vmem:[%s897_s0 + $0x48] sm:$0xff]   ;;  %v566_v46 = vld [vmem:[%s897_s0 + $0x40] sm:$0xff]   ;;  %s712_s0 = smov 96   ;;  %vm547_vm6 = vmpackc.low %vm197_vm5, %vm197_vm5  ;;  %vm515_vm10 = vcmask 1040384   ;;  %vm517_vm11 = vcmask 1041408   ;;  %vm487_vm12 = vcmask 516096  }
  0x19   :  { %v564_v38 = vunpack.c.l.bf16 %v567_v36  ;;  %v565_v39 = vunpack.c.h.bf16 %v567_v36  ;;  %594 = vmatprep.subr.bf16.mxu1 %v707_v0  ;;  %v560_v50 = vunpack.c.l.bf16 %v566_v46  ;;  %v561_v51 = vunpack.c.h.bf16 %v566_v46  ;;  %vm554_vm8 = vmpackc.low %vm214_vm3, %vm214_vm3 }
  0x1b   :  { %v646_v40 = vpack.i.bf16 %v565_v39, %v564_v38  ;;  %595 = vmatpush3.bf16.msra.mxu1 %v665_v45  ;;  %v641_v56 = vpack.i.bf16 %v561_v51, %v560_v50 }
  0x1c   :  { %616 = vmatprep.subr.bf16.mxu1 %v707_v0 }
  0x1e   :  { %589 = vmatmul.mubr.msk.bf16.vlgmr.msra.gmra.mrb[0].mxu0 %vm52_vm1, %v657_v8  ;;  %597 = vmatmul.mubr.msk.bf16.vlgmr.msra.gmra.mrb[0].mxu1 %vm52_vm1, %v780_v5 }
  0x1f   :  { %601 = vmatpush3.bf16.msra.mxu0 %v658_v9  ;;  %612 = vmatprep.mubr.msk.bf16.mxu0 %vm708_vm0, %v707_v0 }
  0x20   :  { %602 = vmatprep.subr.bf16.mxu0 %v707_v0  ;;  %620 = vmatprep.mubr.msk.bf16.mxu1 %vm708_vm0, %v707_v0 }
  0x23   :  { %603 = vmatpush3.bf16.msra.mxu0 %v659_v10 }
  0x24   :  { %604 = vmatprep.subr.bf16.mxu0 %v707_v0 }
  0x27   :  { %605 = vmatpush3.bf16.msra.mxu0 %v660_v11 }
  0x28   :  { %606 = vmatprep.subr.bf16.mxu0 %v707_v0 }
  0x2b   :  { %607 = vmatpush3.bf16.msra.mxu0 %v661_v12 }
  0x2c   :  { %608 = vmatprep.subr.bf16.mxu0 %v707_v0 }
  0x2f   :  { %609 = vmatpush3.bf16.msra.mxu0 %v662_v13 }
  0x30   :  { %610 = vmatprep.subr.bf16.mxu0 %v707_v0 }
  0x33   :  { %611 = vmatpush3.bf16.msra.mxu0 %v663_v14  ;;  %v232_v14 = vld [vmem:[#allocation3 + $0x2] sm:$0x1] }
  0x86   :  { %v241_v15 = vpop.permute.xlu0 %240 }
  0x87   :  { %v247_v17 = vsel %vm52_vm1, %v538_v16, %v241_v15 }
  0x8a   :  { %v245_v18 = vpop.permute.xlu0 %244 }
  0x8b   :  { %v249_v19 = vsel %vm248_vm2, %v247_v17, %v245_v18 }
  0x8c   :  { %v250_v20 = vpack.c.bf16 %v249_v19, %v249_v19 }
  0x8e   :  { %613 = vmatmul.mubr.msk.bf16.vlgmr.msra.gmra.mrb[4].mxu0 %vm214_vm3, %v250_v20 }
  0xf1   :  { %v590_v21 = vpop.f32.mrb[0].mxu0  ;;  %v161_v8 = vpop.f32.mrb[0].mxu1 }
  0xf2   :  { %v828_v22 = vpop.f32.mrb[1].mxu0  ;;  %v598_v9 = vpop.f32.mrb[1].mxu1 }
  0xf3   :  { %v591_v23 = vpop.f32.mrb[2].mxu0  ;;  %v164_v10 = vpop.f32.mrb[2].mxu1 }
  0xf4   :  { %v99_v24 = vpop.f32.mrb[3].mxu0  ;;  %v651_v11 = vpack.i.bf16 %v164_v10, %v161_v8  ;;  %v599_v12 = vpop.f32.mrb[3].mxu1 }
 0x161   :  { %v324_v26 = vpop.f32.mrb[4].mxu0 }
 0x162   :  { %v330_v27 = vadd.f32 %v324_v26, %v230_v25  ;;  %v614_v28 = vpop.f32.mrb[5].mxu0 }
 0x163   :  { %v327_v29 = vpop.f32.mrb[6].mxu0 }
 0x164   :  { %338 = vrot.lane.b32.xlu1 %v330_v27, %s709_s12  ;;  %v615_v30 = vpop.f32.mrb[7].mxu0  ;;  %v546_v31 = vmul.f32 -1.442695, %v330_v27 }
 0x166   :  { %666 = vpow2.f32 %v546_v31 }
 0x170   :  { %v667_v32 = vpop.eup %666 }
 0x171   :  { %v334_v33 = vadd.f32 1.0, %v667_v32 }
 0x173   :  { %668 = vrcp.f32 %v334_v33 }
 0x17d   :  { %v669_v34 = vpop.eup %668 }
 0x17e   :  { %v348_v57 = vsub.f32 1.0, %v669_v34 }
 0x1d6   :  { %v339_v35 = vpop.permute.xlu1 %338 }
 0x1d7   :  { %v341_v37 = vmul.f32 %v669_v34, %v339_v35 }
 0x1d9   :  { %343 = vrot.lane.b32.xlu1 %v341_v37, %s710_s17 }
 0x1dd   :  { %354 = vrot.lane.b32.xlu1 %v765_v2, %s709_s12 }
 0x1e1   :  { %647 = vrot.lane.b32.xlu1 %v646_v40, %s711_s10 }
 0x24b   :  { %v344_v41 = vpop.permute.xlu1 %343 }
 0x24c   :  { %v346_v43 = vadd.f32 %v344_v41, %v330_v27 }
 0x24e   :  { %670 = vtanh.f32 %v346_v43 }
 0x24f   :  { %v355_v44 = vpop.permute.xlu1 %354 }
 0x250   :  { %v357_v59 = vmul.f32 %v669_v34, %v355_v44 }
 0x253   :  { %v648_v47 = vpop.permute.xlu1 %647 }
 0x254   :  { %v650_v48 = vunpack.i.h.bf16 %v648_v47  ;;  %v649_v49 = vunpack.i.l.bf16 %v648_v47 }
 0x256   :  { %v196_v52 = vsel %vm192_vm4, %v591_v23, %v650_v48  ;;  %v195_v53 = vsel %vm192_vm4, %v590_v21, %v649_v49 }
 0x257   :  { %v551_v54 = vpack.c.bf16 %v196_v52, %v195_v53 }
 0x258   :  { %v671_v55 = vpop.eup %670 }
 0x259   :  { %350 = vrot.lane.b32.xlu0 %v671_v55, %s712_s0 }
 0x25d   :  { %642 = vrot.lane.b32.xlu0 %v641_v56, %s711_s10 }
 0x2cb   :  { %v351_v58 = vpop.permute.xlu0 %350 }
 0x2cc   :  { %v353_v60 = vmul.f32 %v351_v58, %v348_v57 }
 0x2ce   :  { %v857_v61 = vadd.f32 %v357_v59, %v353_v60 }
 0x2cf   :  { %v643_v62 = vpop.permute.xlu0 %642 }
 0x2d0   :  { %v645_v63 = vunpack.i.h.bf16 %v643_v62  ;;  %v644_v1 = vunpack.i.l.bf16 %v643_v62  ;;  %v359_v2 = vpack.c.bf16 %v857_v61, %v857_v61 }
 0x2d2   :  { %v194_v5 = vsel %vm192_vm4, %v99_v24, %v645_v63  ;;  %v193_v6 = vsel %vm192_vm4, %v828_v22, %v644_v1  ;;  %361 = vrot.lane.b32.xlu0 %v359_v2, %s712_s0 }
 0x2d3   :  { %v548_v7 = vpack.c.bf16 %v194_v5, %v193_v6 }
 0x2d5   :  { %617 = vmatpush3.bf16.msk.msra.mxu1 %vm547_vm6, %v548_v7 }
 0x2d6   :  { %618 = vmatprep.subr.bf16.mxu1 %v707_v0 }
 0x2d9   :  { %619 = vmatpush3.bf16.msk.msra.mxu1 %vm547_vm6, %v551_v54 }
 0x2da   :  { %624 = vmatprep.subr.bf16.mxu1 %v707_v0 }
 0x344   :  { %v362_v13 = vpop.permute.xlu0 %361 }
 0x345   :  { %621 = vmatmul.mubr.msk.bf16.vlgmr.msra.gmra.mrb[4].mxu1 %vm52_vm1, %v362_v13 }
 0x346   :  { %626 = vmatprep.mubr.msk.bf16.mxu1 %vm708_vm0, %v707_v0 }
 0x418   :  { %v400_v15 = vpop.f32.mrb[4].mxu1 }
 0x419   :  { %v406_v16 = vadd.f32 %v400_v15, %v232_v14  ;;  %v622_v17 = vpop.f32.mrb[5].mxu1 }
 0x41a   :  { %v403_v18 = vpop.f32.mrb[6].mxu1 }
 0x41b   :  { %v623_v19 = vpop.f32.mrb[7].mxu1  ;;  %v408_v20 = vsel %vm407_vm7, %v406_v16, -inf }
 0x41c   :  { %409 = vmax.xlane.f32.xlu1 %v408_v20 }
 0x4a9   :  { %v410_v21 = vpop.xlane.xlu1 %409 }
 0x4aa   :  { %v411_v22 = vsub.f32 %v406_v16, %v410_v21 }
 0x4ac   :  { %v412_v23 = vmul.f32 1.442695, %v411_v22 }
 0x4ae   :  { %672 = vpow2.f32 %v412_v23 }
 0x4b8   :  { %v673_v24 = vpop.eup %672 }
 0x4b9   :  { %v414_v25 = vsel %vm407_vm7, %v673_v24, 0.0 }
 0x4ba   :  { %415 = vadd.xlane.f32.xlu0 %v414_v25 }
 0x4d0   :  { %652 = vrot.lane.b32.xlu0 %v651_v11, %s709_s12  ;;  %s713_s12 = smov 112  }
 0x547   :  { %v416_v26 = vpop.xlane.xlu0 %415 }
 0x548   :  { %674 = vrcp.f32 %v416_v26 }
 0x54b   :  { %v653_v0 = vpop.permute.xlu0 %652 }
 0x54c   :  { %v655_v27 = vunpack.i.h.bf16 %v653_v0  ;;  %v654_v28 = vunpack.i.l.bf16 %v653_v0 }
 0x54e   :  { %v213_v29 = vsel %vm52_vm1, %v776_v4, %v655_v27  ;;  %v212_v30 = vsel %vm52_vm1, %v770_v3, %v654_v28  ;;  %v231_v3 = vld [vmem:[#allocation3 + $0x1] sm:$0x1] }
 0x54f   :  { %v555_v31 = vpack.c.bf16 %v213_v29, %v212_v30 }
 0x551   :  { %625 = vmatpush3.bf16.msk.msra.mxu1 %vm554_vm8, %v555_v31 }
 0x552   :  { %v675_v32 = vpop.eup %674 }
 0x553   :  { %v418_v33 = vmul.f32 %v675_v32, %v416_v26 }
 0x555   :  { %v419_v34 = vsub.f32 2.0, %v418_v33 }
 0x557   :  { %v420_v35 = vmul.f32 %v675_v32, %v419_v34 }
 0x559   :  { %v421_v36 = vmul.f32 %v673_v24, %v420_v35 }
 0x55b   :  { %v422_v37 = vpack.c.bf16 %v421_v36, %v421_v36 }
 0x55d   :  { %627 = vmatmul.mubr.msk.bf16.vlgmr.msra.gmra.mrb[8].mxu1 %vm192_vm4, %v422_v37 }
 0x630   :  { %v460_v38 = vpop.f32.mrb[8].mxu1 }
 0x631   :  { %467 = vrot.lane.b32.xlu1 %v460_v38, %s713_s12  ;;  %v628_v4 = vpop.f32.mrb[9].mxu1  ;;  %v506_v52 = vsel %vm52_vm1, %v460_v38, 0.0 }
 0x632   :  { %v463_v39 = vpop.f32.mrb[10].mxu1 }
 0x633   :  { %v629_v40 = vpop.f32.mrb[11].mxu1 }
 0x635   :  { %472 = vrot.lane.b32.xlu1 %v231_v3, %s711_s10 }
 0x6a3   :  { %v468_v41 = vpop.permute.xlu1 %467 }
 0x6a4   :  { %v470_v42 = vadd.f32 %v468_v41, %v400_v15 }
 0x6a7   :  { %v473_v43 = vpop.permute.xlu1 %472 }
 0x6a8   :  { %v475_v44 = vadd.f32 %v473_v43, %v470_v42 }
 0x6aa   :  { %v477_v45 = vsel %vm476_vm9, %v475_v44, -inf }
 0x6ab   :  { %478 = vmax.xlane.f32.xlu0 %v477_v45 }
 0x6c1   :  { %508 = vrot.lane.b32.xlu0 %v857_v61, %s712_s0 }
 0x6c5   :  { %500 = vrot.lane.b32.xlu0 %v421_v36, %s710_s17 }
 0x738   :  { %v479_v46 = vpop.xlane.xlu0 %478 }
 0x739   :  { %v480_v47 = vsub.f32 %v475_v44, %v479_v46 }
 0x73b   :  { %v481_v48 = vmul.f32 1.442695, %v480_v47 }
 0x73c   :  { %v509_v49 = vpop.permute.xlu0 %508 }
 0x73d   :  { %676 = vpow2.f32 %v481_v48  ;;  %v511_v50 = vsel %vm52_vm1, %v509_v49, 0.0 }
 0x73e   :  { %v513_v51 = vrot.slane %v511_v50, 7 }
 0x740   :  { %v516_v53 = vsel %vm515_vm10, %v506_v52, %v513_v51  ;;  %v501_v63 = vpop.permute.xlu0 %500 }
 0x741   :  { %v518_v54 = vsel %vm517_vm11, %v516_v53, 0.0 }
 0x742   :  { %519 = vst [vmem:[%s902_s5] sm:$0xff] %v518_v54 }
 0x747   :  { %v677_v55 = vpop.eup %676 }
 0x748   :  { %484 = vrot.lane.b32.xlu1 %v677_v55, %s713_s12 }
 0x7ba   :  { %v485_v56 = vpop.permute.xlu1 %484 }
 0x7bb   :  { %v488_v57 = vsel %vm487_vm12, %v485_v56, 0.0 }
 0x7bc   :  { %489 = vadd.xlane.f32.xlu1 %v488_v57 }
 0x849   :  { %v490_v58 = vpop.xlane.xlu1 %489 }
 0x84a   :  { %678 = vlog2.f32 %v490_v58 }
 0x854   :  { %v679_v59 = vpop.eup %678 }
 0x855   :  { %v492_v60 = vmul.f32 0.6931472, %v679_v59 }
 0x857   :  { %v493_v61 = vadd.f32 %v492_v60, %v479_v46 }
 0x859   :  { %v494_v62 = vsub.f32 %v475_v44, %v493_v61 }
 0x85b   :  { %496 = vrot.lane.b32.xlu1 %v494_v62, %s713_s12 }
 0x8cd   :  { %v497_v1 = vpop.permute.xlu1 %496 }
 0x8ce   :  { %v503_v2 = vsel %vm248_vm2, %v497_v1, %v501_v63 }
 0x8cf   :  { %v504_v5 = vsel %vm197_vm5, %v503_v2, 0.0 }
 0x8d0   :  { %505 = vst [vmem:[%s901_s4] sm:$0x1] %v504_v5 }
 0x8d1   :  { %528 = vsyncpa [#allocation4], 1 }

</bundles_post_ra>
